<compile_context>
chip_gen: v7x
topology: tpu7x:2x2x1
jax: 0.10.0
libtpu: 0.0.40
codegen_flags: <defaults>
</compile_context>

<pallas_src>
import functools
from typing import NamedTuple

import jax
import jax.numpy as jnp
from jax.experimental import pallas as pl
from jax.experimental.pallas import tpu as pltpu

LN_EPS = 1e-5        # PyTorch nn.LayerNorm default
LANE = 128
SUBLANE_BF16 = 16    # bf16 packs 16 sublanes per vreg


def _round_up(n, m):
    return ((n + m - 1) // m) * m


class FFNNMeta(NamedTuple):
    num_hidden: int
    d_in: int
    hidden_size: int
    out_size: int
    d_in_pad: int
    h_pad: int
    o_pad: int


# ---------------------------------------------------------------------------
# Fused kernel: (Linear -> LayerNorm -> ReLU) * num_hidden -> Linear
# ---------------------------------------------------------------------------
def _ffnn_fused_kernel(meta: FFNNMeta, x_ref, *refs):
    """One batch tile of the full network.

    refs layout: [w0, b0, g0, bt0, w1, b1, g1, bt1, ..., w_out, b_out, o_ref]
    Weights are bf16 (MXU inputs); bias/gamma/beta and all accumulation are
    f32.  Padded feature columns are exactly zero end-to-end.
    """
    o_ref = refs[-1]
    num_hidden = meta.num_hidden
    inv_h = 1.0 / float(meta.hidden_size) if num_hidden else 1.0

    # Lane mask over the real hidden columns (only needed if padded).
    if num_hidden and meta.h_pad != meta.hidden_size:
        col = jax.lax.broadcasted_iota(jnp.int32, (1, meta.h_pad), 1)
        valid = (col < meta.hidden_size).astype(jnp.float32)
    else:
        valid = None

    h = x_ref[...]                                           # (TB, D_pad) bf16
    idx = 0
    for _ in range(num_hidden):
        w_ref, b_ref, g_ref, bt_ref = refs[idx:idx + 4]
        idx += 4
        z = jnp.dot(h, w_ref[...], preferred_element_type=jnp.float32)
        z = z + b_ref[...]                                   # (TB, H_pad) f32
        # LayerNorm (two-pass, f32).  Padded z columns are exactly zero
        # (zero weight columns + zero bias), so summing over all columns and
        # dividing by the REAL width gives the correct mean; the centered
        # values are masked before the sum of squares.
        mean = jnp.sum(z, axis=-1, keepdims=True) * inv_h
        c = z - mean
        cm = c * valid if valid is not None else c
        var = jnp.sum(cm * cm, axis=-1, keepdims=True) * inv_h
        zn = c * jax.lax.rsqrt(var + LN_EPS)
        zn = zn * g_ref[...] + bt_ref[...]                   # padded g/b are 0
        h = jnp.maximum(zn, 0.0).astype(jnp.bfloat16)        # ReLU, bf16 for MXU
        # TODO(synk): nn.Dropout (train-mode) not implemented; eval semantics.
    w_ref, b_ref = refs[idx], refs[idx + 1]
    y = jnp.dot(h, w_ref[...], preferred_element_type=jnp.float32) + b_ref[...]
    o_ref[...] = y.astype(o_ref.dtype)


# ---------------------------------------------------------------------------
# One-time parameter preparation (pad + cast, hoisted out of the forward path)
# ---------------------------------------------------------------------------
def _pad2(a, rows, cols, dtype):
    a = jnp.asarray(a, dtype)
    return jnp.zeros((rows, cols), dtype).at[: a.shape[0], : a.shape[1]].set(a)


def prepare_ffnn_params(params):
    """Pad / cast parameters once; returns (static meta, flat param tuple)."""
    hidden = params["hidden"]
    w_out, b_out = params["out"]
    num_hidden = len(hidden)
    d_in = hidden[0][0].shape[0] if num_hidden else w_out.shape[0]
    # Note: the PyTorch module uses a single hidden_size for every hidden
    # layer / LayerNorm, so one inv_h is correct for all of them.
    hidden_size = hidden[0][0].shape[1] if num_hidden else 0
    out_size = w_out.shape[1]

    d_in_pad = _round_up(d_in, LANE)
    h_pad = _round_up(hidden_size, LANE) if num_hidden else 0
    o_pad = _round_up(out_size, LANE)

    flat = []
    prev_pad = d_in_pad
    for (w, b, g, bt) in hidden:
        flat += [
            _pad2(w, prev_pad, h_pad, jnp.bfloat16),
            _pad2(b, 1, h_pad, jnp.float32),
            _pad2(g, 1, h_pad, jnp.float32),
            _pad2(bt, 1, h_pad, jnp.float32),
        ]
        prev_pad = h_pad
    flat += [
        _pad2(w_out, prev_pad, o_pad, jnp.bfloat16),
        _pad2(b_out, 1, o_pad, jnp.float32),
    ]
    meta = FFNNMeta(num_hidden, d_in, hidden_size, out_size,
                    d_in_pad, h_pad, o_pad)
    return meta, tuple(flat)


def _vmem_limit_bytes():
    """~75% of physical VMEM (96 MiB v5e/v6e, 48 MiB v7x); safe fallback."""
    cap = 64 * 1024 * 1024
    try:
        cap = int(pltpu.get_tpu_info().vmem_capacity_bytes)
    except Exception:
        pass
    return max(32 * 1024 * 1024, (cap * 3) // 4)


# ---------------------------------------------------------------------------
# Forward
# ---------------------------------------------------------------------------
@functools.partial(jax.jit, static_argnames=("meta",))
def _ffnn_forward_impl(meta: FFNNMeta, flat_params, x):
    B = x.shape[0]
    x2d = x.reshape(B, -1).astype(jnp.bfloat16)              # bf16 input DMA
    assert x2d.shape[1] == meta.d_in, (x2d.shape, meta.d_in)

    # Batch tile: bf16 -> 16-row granularity; cap 256 to match the 256-wide
    # MXU on v6e/v7x; cdiv(B, 2) keeps >= 2 grid steps for large B so the
    # "parallel" axis can split across v7x's two TensorCores.
    tb = max(SUBLANE_BF16, min(256, _round_up(pl.cdiv(B, 2), SUBLANE_BF16)))
    b_pad = _round_up(B, tb)
    x_p = jnp.zeros((b_pad, meta.d_in_pad), jnp.bfloat16)
    x_p = x_p.at[:B, : meta.d_in].set(x2d)

    # Parameters: whole-array VMEM residents (copied in once, no per-step DMA,
    # single-buffered -> half the footprint of a double-buffered blocked spec).
    # TODO(synk): if padded bf16 weights ever exceed the VMEM budget (notably
    # v7x: 64 MiB/TC), switch weights to memory_space=pl.ANY and stream them
    # per layer with a manual double buffer instead of full residency.
    param_spec = pl.BlockSpec(memory_space=pltpu.MemorySpace.VMEM)
    in_specs = [pl.BlockSpec((tb, meta.d_in_pad), lambda i: (i, 0))]
    in_specs += [param_spec] * len(flat_params)
    out_spec = pl.BlockSpec((tb, meta.o_pad), lambda i: (i, 0))

    kernel = functools.partial(_ffnn_fused_kernel, meta)
    y_pad = pl.pallas_call(
        kernel,
        out_shape=jax.ShapeDtypeStruct((b_pad, meta.o_pad), jnp.float32),
        grid=(b_pad // tb,),
        in_specs=in_specs,
        out_specs=out_spec,
        compiler_params=pltpu.CompilerParams(
            dimension_semantics=("parallel",),
            vmem_limit_bytes=_vmem_limit_bytes(),
        ),
    )(x_p, *flat_params)

    return y_pad[:B, : meta.out_size]


def ffnn_forward(prepared, x):
    """x: (B, L, N) -> (B, output_size).  `prepared` = prepare_ffnn_params(...)."""
    meta, flat = prepared
    return _ffnn_forward_impl(meta, flat, x)


# ---------------------------------------------------------------------------
# Parameter init (mirrors nn.Linear U(-1/sqrt(fan_in), 1/sqrt(fan_in)))
# ---------------------------------------------------------------------------
def init_ffnn_params(key, input_size, num_hidden, hidden_size, output_size):
    params = {"hidden": [], "out": None}
    prev = input_size
    for _ in range(num_hidden):
        key, kw, kb = jax.random.split(key, 3)
        bound = 1.0 / jnp.sqrt(prev)
        w = jax.random.uniform(kw, (prev, hidden_size), jnp.float32, -bound, bound)
        b = jax.random.uniform(kb, (1, hidden_size), jnp.float32, -bound, bound)
        gamma = jnp.ones((1, hidden_size), jnp.float32)
        beta = jnp.zeros((1, hidden_size), jnp.float32)
        params["hidden"].append((w, b, gamma, beta))
        prev = hidden_size
    key, kw, kb = jax.random.split(key, 3)
    bound = 1.0 / jnp.sqrt(prev)
    w = jax.random.uniform(kw, (prev, output_size), jnp.float32, -bound, bound)
    b = jax.random.uniform(kb, (1, output_size), jnp.float32, -bound, bound)
    params["out"] = (w, b)
    return params


# ---------------------------------------------------------------------------
# Plain-JAX reference (same bf16-matmul / f32-accumulate numerics)
# ---------------------------------------------------------------------------
def ffnn_reference(params, x):
    B = x.shape[0]
    h = x.reshape(B, -1).astype(jnp.float32)
    for (w, b, g, bt) in params["hidden"]:
        z = jnp.dot(h.astype(jnp.bfloat16), w.astype(jnp.bfloat16),
                    preferred_element_type=jnp.float32) + b
        mean = jnp.mean(z, axis=-1, keepdims=True)
        var = jnp.mean((z - mean) ** 2, axis=-1, keepdims=True)
        z = (z - mean) * jax.lax.rsqrt(var + LN_EPS)
        z = z * g + bt
        h = jnp.maximum(z, 0.0)
    w, b = params["out"]
    return jnp.dot(h.astype(jnp.bfloat16), w.astype(jnp.bfloat16),
                   preferred_element_type=jnp.float32) + b


if __name__ == "__main__":
    # Small shapes consistent with forward(x: (B, L, N)) -> (B, output_size).
    B, L, N = 2, 8, 4            # input_size = L * N = 32
    input_size = L * N
    num_hidden = 2
    hidden_size = 32
    output_size = 8

    key = jax.random.PRNGKey(0)
    key, kx, kp = jax.random.split(key, 3)
    x = jax.random.normal(kx, (B, L, N), dtype=jnp.float32)
    params = init_ffnn_params(kp, input_size, num_hidden, hidden_size, output_size)

    prepared = prepare_ffnn_params(params)   # pad/cast ONCE, reused across calls
    out = jax.block_until_ready(ffnn_forward(prepared, x))

    ref = ffnn_reference(params, x)
    assert out.shape == (B, output_size), out.shape
    assert jnp.allclose(out, ref, atol=2e-2, rtol=2e-2), (
        "mismatch vs reference\n" + str(out) + "\n" + str(ref)
    )

    print("KERNEL_OK")
</pallas_src>

<mosaic_0001>
module attributes {stable_mosaic.version = 11 : i64} {
  func.func @_ffnn_fused_kernel(%arg0: i32, %arg1: memref<16x128xbf16, #tpu.memory_space<vmem>>, %arg2: memref<128x128xbf16, #tpu.memory_space<vmem>>, %arg3: memref<1x128xf32, #tpu.memory_space<vmem>>, %arg4: memref<1x128xf32, #tpu.memory_space<vmem>>, %arg5: memref<1x128xf32, #tpu.memory_space<vmem>>, %arg6: memref<128x128xbf16, #tpu.memory_space<vmem>>, %arg7: memref<1x128xf32, #tpu.memory_space<vmem>>, %arg8: memref<1x128xf32, #tpu.memory_space<vmem>>, %arg9: memref<1x128xf32, #tpu.memory_space<vmem>>, %arg10: memref<128x128xbf16, #tpu.memory_space<vmem>>, %arg11: memref<1x128xf32, #tpu.memory_space<vmem>>, %arg12: memref<16x128xf32, #tpu.memory_space<vmem>>) attributes {dimension_semantics = [#tpu.dimension_semantics<parallel>], iteration_bounds = array<i64: 1>, scalar_prefetch = 0 : i64, scratch_operands = 0 : i64, tpu.core_type = #tpu.core_type<tc>, window_params = [{transform_indices = @transform_0, window_bounds = array<i64: 16, 128>}, {pipeline_mode = #tpu.pipeline_mode<synchronous>, transform_indices = @transform_1, window_bounds = array<i64: 128, 128>}, {pipeline_mode = #tpu.pipeline_mode<synchronous>, transform_indices = @transform_2, window_bounds = array<i64: 1, 128>}, {pipeline_mode = #tpu.pipeline_mode<synchronous>, transform_indices = @transform_3, window_bounds = array<i64: 1, 128>}, {pipeline_mode = #tpu.pipeline_mode<synchronous>, transform_indices = @transform_4, window_bounds = array<i64: 1, 128>}, {pipeline_mode = #tpu.pipeline_mode<synchronous>, transform_indices = @transform_5, window_bounds = array<i64: 128, 128>}, {pipeline_mode = #tpu.pipeline_mode<synchronous>, transform_indices = @transform_6, window_bounds = array<i64: 1, 128>}, {pipeline_mode = #tpu.pipeline_mode<synchronous>, transform_indices = @transform_7, window_bounds = array<i64: 1, 128>}, {pipeline_mode = #tpu.pipeline_mode<synchronous>, transform_indices = @transform_8, window_bounds = array<i64: 1, 128>}, {pipeline_mode = #tpu.pipeline_mode<synchronous>, transform_indices = @transform_9, window_bounds = array<i64: 128, 128>}, {pipeline_mode = #tpu.pipeline_mode<synchronous>, transform_indices = @transform_10, window_bounds = array<i64: 1, 128>}, {transform_indices = @transform_11, window_bounds = array<i64: 16, 128>}]} {
    %0 = tpu.iota {dimensions = array<i32: 1>} : vector<1x128xi32>
    %c32_i32 = arith.constant 32 : i32
    %1 = vector.broadcast %c32_i32 : i32 to vector<1x128xi32>
    %2 = arith.cmpi slt, %0, %1 : vector<1x128xi32>
    %3 = arith.extui %2 : vector<1x128xi1> to vector<1x128xi32>
    %4 = arith.sitofp %3 : vector<1x128xi32> to vector<1x128xf32>
    %c0 = arith.constant 0 : index
    %c0_0 = arith.constant 0 : index
    %5 = vector.load %arg1[%c0, %c0_0] : memref<16x128xbf16, #tpu.memory_space<vmem>>, vector<16x128xbf16>
    %c0_1 = arith.constant 0 : index
    %c0_2 = arith.constant 0 : index
    %6 = vector.load %arg2[%c0_1, %c0_2] : memref<128x128xbf16, #tpu.memory_space<vmem>>, vector<128x128xbf16>
    %cst = arith.constant dense<0.000000e+00> : vector<16x128xf32>
    %7 = tpu.matmul %5, %6, %cst {dimension_numbers = #tpu.dot_dimension_numbers<[1], [0], [0], [1], [0, 0, 1, 1], [], []>} : vector<16x128xbf16>, vector<128x128xbf16>, vector<16x128xf32> -> vector<16x128xf32>
    %c0_3 = arith.constant 0 : index
    %c0_4 = arith.constant 0 : index
    %8 = vector.load %arg3[%c0_3, %c0_4] : memref<1x128xf32, #tpu.memory_space<vmem>>, vector<1x128xf32>
    %9 = vector.broadcast %8 : vector<1x128xf32> to vector<16x128xf32>
    %10 = arith.addf %7, %9 : vector<16x128xf32>
    %cst_5 = arith.constant dense<0.000000e+00> : vector<16xf32>
    %11 = vector.multi_reduction <add>, %10, %cst_5 [1] : vector<16x128xf32> to vector<16xf32>
    %12 = vector.shape_cast %11 : vector<16xf32> to vector<16x1xf32>
    %cst_6 = arith.constant 3.125000e-02 : f32
    %13 = vector.broadcast %cst_6 : f32 to vector<16x1xf32>
    %14 = arith.mulf %12, %13 : vector<16x1xf32>
    %15 = vector.broadcast %14 : vector<16x1xf32> to vector<16x128xf32>
    %16 = arith.subf %10, %15 : vector<16x128xf32>
    %17 = vector.broadcast %4 : vector<1x128xf32> to vector<16x128xf32>
    %18 = arith.mulf %16, %17 : vector<16x128xf32>
    %19 = arith.mulf %18, %18 : vector<16x128xf32>
    %cst_7 = arith.constant dense<0.000000e+00> : vector<16xf32>
    %20 = vector.multi_reduction <add>, %19, %cst_7 [1] : vector<16x128xf32> to vector<16xf32>
    %21 = vector.shape_cast %20 : vector<16xf32> to vector<16x1xf32>
    %cst_8 = arith.constant 3.125000e-02 : f32
    %22 = vector.broadcast %cst_8 : f32 to vector<16x1xf32>
    %23 = arith.mulf %21, %22 : vector<16x1xf32>
    %cst_9 = arith.constant 9.99999974E-6 : f32
    %24 = vector.broadcast %cst_9 : f32 to vector<16x1xf32>
    %25 = arith.addf %23, %24 : vector<16x1xf32>
    %26 = math.rsqrt %25 : vector<16x1xf32>
    %27 = vector.broadcast %26 : vector<16x1xf32> to vector<16x128xf32>
    %28 = arith.mulf %16, %27 : vector<16x128xf32>
    %c0_10 = arith.constant 0 : index
    %c0_11 = arith.constant 0 : index
    %29 = vector.load %arg4[%c0_10, %c0_11] : memref<1x128xf32, #tpu.memory_space<vmem>>, vector<1x128xf32>
    %30 = vector.broadcast %29 : vector<1x128xf32> to vector<16x128xf32>
    %31 = arith.mulf %28, %30 : vector<16x128xf32>
    %c0_12 = arith.constant 0 : index
    %c0_13 = arith.constant 0 : index
    %32 = vector.load %arg5[%c0_12, %c0_13] : memref<1x128xf32, #tpu.memory_space<vmem>>, vector<1x128xf32>
    %33 = vector.broadcast %32 : vector<1x128xf32> to vector<16x128xf32>
    %34 = arith.addf %31, %33 : vector<16x128xf32>
    %cst_14 = arith.constant 0.000000e+00 : f32
    %35 = vector.broadcast %cst_14 : f32 to vector<16x128xf32>
    %36 = arith.maximumf %34, %35 : vector<16x128xf32>
    %37 = arith.truncf %36 : vector<16x128xf32> to vector<16x128xbf16>
    %c0_15 = arith.constant 0 : index
    %c0_16 = arith.constant 0 : index
    %38 = vector.load %arg6[%c0_15, %c0_16] : memref<128x128xbf16, #tpu.memory_space<vmem>>, vector<128x128xbf16>
    %cst_17 = arith.constant dense<0.000000e+00> : vector<16x128xf32>
    %39 = tpu.matmul %37, %38, %cst_17 {dimension_numbers = #tpu.dot_dimension_numbers<[1], [0], [0], [1], [0, 0, 1, 1], [], []>} : vector<16x128xbf16>, vector<128x128xbf16>, vector<16x128xf32> -> vector<16x128xf32>
    %c0_18 = arith.constant 0 : index
    %c0_19 = arith.constant 0 : index
    %40 = vector.load %arg7[%c0_18, %c0_19] : memref<1x128xf32, #tpu.memory_space<vmem>>, vector<1x128xf32>
    %41 = vector.broadcast %40 : vector<1x128xf32> to vector<16x128xf32>
    %42 = arith.addf %39, %41 : vector<16x128xf32>
    %cst_20 = arith.constant dense<0.000000e+00> : vector<16xf32>
    %43 = vector.multi_reduction <add>, %42, %cst_20 [1] : vector<16x128xf32> to vector<16xf32>
    %44 = vector.shape_cast %43 : vector<16xf32> to vector<16x1xf32>
    %cst_21 = arith.constant 3.125000e-02 : f32
    %45 = vector.broadcast %cst_21 : f32 to vector<16x1xf32>
    %46 = arith.mulf %44, %45 : vector<16x1xf32>
    %47 = vector.broadcast %46 : vector<16x1xf32> to vector<16x128xf32>
    %48 = arith.subf %42, %47 : vector<16x128xf32>
    %49 = vector.broadcast %4 : vector<1x128xf32> to vector<16x128xf32>
    %50 = arith.mulf %48, %49 : vector<16x128xf32>
    %51 = arith.mulf %50, %50 : vector<16x128xf32>
    %cst_22 = arith.constant dense<0.000000e+00> : vector<16xf32>
    %52 = vector.multi_reduction <add>, %51, %cst_22 [1] : vector<16x128xf32> to vector<16xf32>
    %53 = vector.shape_cast %52 : vector<16xf32> to vector<16x1xf32>
    %cst_23 = arith.constant 3.125000e-02 : f32
    %54 = vector.broadcast %cst_23 : f32 to vector<16x1xf32>
    %55 = arith.mulf %53, %54 : vector<16x1xf32>
    %cst_24 = arith.constant 9.99999974E-6 : f32
    %56 = vector.broadcast %cst_24 : f32 to vector<16x1xf32>
    %57 = arith.addf %55, %56 : vector<16x1xf32>
    %58 = math.rsqrt %57 : vector<16x1xf32>
    %59 = vector.broadcast %58 : vector<16x1xf32> to vector<16x128xf32>
    %60 = arith.mulf %48, %59 : vector<16x128xf32>
    %c0_25 = arith.constant 0 : index
    %c0_26 = arith.constant 0 : index
    %61 = vector.load %arg8[%c0_25, %c0_26] : memref<1x128xf32, #tpu.memory_space<vmem>>, vector<1x128xf32>
    %62 = vector.broadcast %61 : vector<1x128xf32> to vector<16x128xf32>
    %63 = arith.mulf %60, %62 : vector<16x128xf32>
    %c0_27 = arith.constant 0 : index
    %c0_28 = arith.constant 0 : index
    %64 = vector.load %arg9[%c0_27, %c0_28] : memref<1x128xf32, #tpu.memory_space<vmem>>, vector<1x128xf32>
    %65 = vector.broadcast %64 : vector<1x128xf32> to vector<16x128xf32>
    %66 = arith.addf %63, %65 : vector<16x128xf32>
    %cst_29 = arith.constant 0.000000e+00 : f32
    %67 = vector.broadcast %cst_29 : f32 to vector<16x128xf32>
    %68 = arith.maximumf %66, %67 : vector<16x128xf32>
    %69 = arith.truncf %68 : vector<16x128xf32> to vector<16x128xbf16>
    %c0_30 = arith.constant 0 : index
    %c0_31 = arith.constant 0 : index
    %70 = vector.load %arg10[%c0_30, %c0_31] : memref<128x128xbf16, #tpu.memory_space<vmem>>, vector<128x128xbf16>
    %cst_32 = arith.constant dense<0.000000e+00> : vector<16x128xf32>
    %71 = tpu.matmul %69, %70, %cst_32 {dimension_numbers = #tpu.dot_dimension_numbers<[1], [0], [0], [1], [0, 0, 1, 1], [], []>} : vector<16x128xbf16>, vector<128x128xbf16>, vector<16x128xf32> -> vector<16x128xf32>
    %c0_33 = arith.constant 0 : index
    %c0_34 = arith.constant 0 : index
    %72 = vector.load %arg11[%c0_33, %c0_34] : memref<1x128xf32, #tpu.memory_space<vmem>>, vector<1x128xf32>
    %73 = vector.broadcast %72 : vector<1x128xf32> to vector<16x128xf32>
    %74 = arith.addf %71, %73 : vector<16x128xf32>
    %c0_35 = arith.constant 0 : index
    %c0_36 = arith.constant 0 : index
    %75 = vector.load %arg12[%c0_35, %c0_36] : memref<16x128xf32, #tpu.memory_space<vmem>>, vector<16x128xf32>
    tpu.vector_store %arg12[%c0_35, %c0_36], %74 {strides = array<i32>} : memref<16x128xf32, #tpu.memory_space<vmem>>, vector<16x128xf32>,
    return
  }
  func.func @transform_0(%arg0: i32) -> (i32, i32) {
    %c0_i32 = arith.constant 0 : i32
    %c0_i32_0 = arith.constant 0 : i32
    return %arg0, %c0_i32 : i32, i32
  }
  func.func @transform_1(%arg0: i32) -> (i32, i32) {
    %c0_i32 = arith.constant 0 : i32
    %c0_i32_0 = arith.constant 0 : i32
    %c0_i32_1 = arith.constant 0 : i32
    return %c0_i32, %c0_i32_0 : i32, i32
  }
  func.func @transform_2(%arg0: i32) -> (i32, i32) {
    %c0_i32 = arith.constant 0 : i32
    %c0_i32_0 = arith.constant 0 : i32
    %c0_i32_1 = arith.constant 0 : i32
    return %c0_i32, %c0_i32_0 : i32, i32
  }
  func.func @transform_3(%arg0: i32) -> (i32, i32) {
    %c0_i32 = arith.constant 0 : i32
    %c0_i32_0 = arith.constant 0 : i32
    %c0_i32_1 = arith.constant 0 : i32
    return %c0_i32, %c0_i32_0 : i32, i32
  }
  func.func @transform_4(%arg0: i32) -> (i32, i32) {
    %c0_i32 = arith.constant 0 : i32
    %c0_i32_0 = arith.constant 0 : i32
    %c0_i32_1 = arith.constant 0 : i32
    return %c0_i32, %c0_i32_0 : i32, i32
  }
  func.func @transform_5(%arg0: i32) -> (i32, i32) {
    %c0_i32 = arith.constant 0 : i32
    %c0_i32_0 = arith.constant 0 : i32
    %c0_i32_1 = arith.constant 0 : i32
    return %c0_i32, %c0_i32_0 : i32, i32
  }
  func.func @transform_6(%arg0: i32) -> (i32, i32) {
    %c0_i32 = arith.constant 0 : i32
    %c0_i32_0 = arith.constant 0 : i32
    %c0_i32_1 = arith.constant 0 : i32
    return %c0_i32, %c0_i32_0 : i32, i32
  }
  func.func @transform_7(%arg0: i32) -> (i32, i32) {
    %c0_i32 = arith.constant 0 : i32
    %c0_i32_0 = arith.constant 0 : i32
    %c0_i32_1 = arith.constant 0 : i32
    return %c0_i32, %c0_i32_0 : i32, i32
  }
  func.func @transform_8(%arg0: i32) -> (i32, i32) {
    %c0_i32 = arith.constant 0 : i32
    %c0_i32_0 = arith.constant 0 : i32
    %c0_i32_1 = arith.constant 0 : i32
    return %c0_i32, %c0_i32_0 : i32, i32
  }
  func.func @transform_9(%arg0: i32) -> (i32, i32) {
    %c0_i32 = arith.constant 0 : i32
    %c0_i32_0 = arith.constant 0 : i32
    %c0_i32_1 = arith.constant 0 : i32
    return %c0_i32, %c0_i32_0 : i32, i32
  }
  func.func @transform_10(%arg0: i32) -> (i32, i32) {
    %c0_i32 = arith.constant 0 : i32
    %c0_i32_0 = arith.constant 0 : i32
    %c0_i32_1 = arith.constant 0 : i32
    return %c0_i32, %c0_i32_0 : i32, i32
  }
  func.func @transform_11(%arg0: i32) -> (i32, i32) {
    %c0_i32 = arith.constant 0 : i32
    %c0_i32_0 = arith.constant 0 : i32
    return %arg0, %c0_i32 : i32, i32
  }
}

</mosaic_0001>

<bundles_post_ra>
// kernel: _ffnn_forward_impl.1
= control target key start
LH: loop header
LB: loop body
LE: loop exit
PB: predicated region body
PF: predicated region fallthrough
CT: control target
= control target key end

     0   :  { %16 = vsyncpa [#allocation3], 0  ;;  %s1001_s0 = inlined_call_operand.vmem [shape: bf16[16,128], index: 0, kind: input, shape index: {}]   ;;  %s1002_s1 = inlined_call_operand.hbm [shape: bf16[128,128], index: 1, kind: input, shape index: {}]   ;;  %s1003_s2 = inlined_call_operand.vmem [shape: f32[1,128], index: 2, kind: input, shape index: {}]   ;;  %s1004_s3 = inlined_call_operand.vmem [shape: f32[1,128], index: 3, kind: input, shape index: {}]   ;;  %s1005_s4 = inlined_call_operand.vmem [shape: f32[1,128], index: 4, kind: input, shape index: {}]   ;;  %s1006_s5 = inlined_call_operand.hbm [shape: bf16[128,128], index: 5, kind: input, shape index: {}]   ;;  %s1007_s6 = inlined_call_operand.vmem [shape: f32[1,128], index: 6, kind: input, shape index: {}]   ;;  %s1008_s7 = inlined_call_operand.vmem [shape: f32[1,128], index: 7, kind: input, shape index: {}]   ;;  %s1009_s8 = inlined_call_operand.hbm [shape: f32[1,128], index: 8, kind: input, shape index: {}]   ;;  %s1010_s9 = inlined_call_operand.vmem [shape: bf16[128,128], index: 9, kind: input, shape index: {}]   ;;  %s1011_s10 = inlined_call_operand.hbm [shape: f32[1,128], index: 10, kind: input, shape index: {}]   ;;  %s1012_s11 = inlined_call_operand.vmem [shape: f32[16,128], index: 11, kind: output, shape index: {}]  }
   0x1   :  { %17 = vsyncpa [#allocation5], 0 }
   0x2   :  { %18 = vsyncpa [#allocation8], 0  ;;  %s793_s17 = smov [#allocation4]   ;;  %s794_s19 = smov [#allocation2]  }
   0x3   :  { %s44_s18 = sshll.u32 %s793_s17, 4  ;;  %s26_s20 = sshll.u32 %s794_s19, 4  ;;  %s45_s18 = int_to_ptr.vmem [resolvable:$true] %s44_s18  ;;  %s861_s20 = int_to_ptr.vmem [resolvable:$true] %s26_s20 }
   0x4   :  { %s699_s23 = scalar_lea.hbm %s1006_s5, 1024 }
   0x5   :  { %p700_p0 = scmp.ne.s32.totalorder %s1006_s5, %s699_s23  ;;  %p703_p1 = scmp.lt.u32.totalorder %s699_s23, %s1006_s5 }
   0x7   :  { %p705_p2 = pnand %p703_p1, %p700_p0 }
   0x9   :  { %708 = shalt.err (!%p705_p2)
}
   0xa   :  { %s709_s28 = scalar_lea.vmem %s45_s18, 1024  ;;  %p714_p4 = scmp.lt.s32.totalorder %s45_s18, %s45_s18 }
   0xb   :  { %p710_p3 = scmp.ne.s32.totalorder %s45_s18, %s709_s28  ;;  %p715_p5 = scmp.lt.s32.totalorder %s709_s28, %s709_s28 }
   0xd   :  { %p716_p6 = por %p715_p5, %p714_p4 }
   0xf   :  { %p717_p7 = pnand %p716_p6, %p710_p3 }
  0x11   :  { %720 = shalt.err (!%p717_p7)
}
  0x12   :  { %s795_s29 = smov 64   ;;  %s796_s30 = smov 4  }
  0x13   :  { %50 = dma.hbm_to_vmem [thread:$0]  %s1006_s5, 1024, %s45_s18, [#allocation5], %s795_s29, %s795_s29, %s796_s30  }
  0x14   :  { %s721_s16 = scalar_lea.hbm %s1002_s1, 1024 }
  0x15   :  { %p722_p8 = scmp.ne.s32.totalorder %s1002_s1, %s721_s16  ;;  %p725_p9 = scmp.lt.u32.totalorder %s721_s16, %s1002_s1 }
  0x17   :  { %p727_p10 = pnand %p725_p9, %p722_p8 }
  0x19   :  { %730 = shalt.err (!%p727_p10)
}
  0x1a   :  { %s731_s23 = scalar_lea.vmem %s861_s20, 1024  ;;  %p736_p12 = scmp.lt.s32.totalorder %s861_s20, %s861_s20 }
  0x1b   :  { %p732_p11 = scmp.ne.s32.totalorder %s861_s20, %s731_s23  ;;  %p737_p13 = scmp.lt.s32.totalorder %s731_s23, %s731_s23 }
  0x1d   :  { %p738_p0 = por %p737_p13, %p736_p12 }
  0x1f   :  { %p739_p1 = pnand %p738_p0, %p732_p11 }
  0x21   :  { %742 = shalt.err (!%p739_p1)
}
  0x22   :  { %32 = dma.hbm_to_vmem [thread:$0]  %s1002_s1, 1024, %s861_s20, [#allocation3], %s795_s29, %s795_s29, %s796_s30  }
  0x23   :  { %s797_s24 = smov [#allocation6]   ;;  %s798_s26 = smov [#allocation7]  }
  0x24   :  { %s61_s25 = sshll.u32 %s797_s24, 4  ;;  %s73_s27 = sshll.u32 %s798_s26, 4  ;;  %s62_s25 = int_to_ptr.vmem [resolvable:$true] %s61_s25  ;;  %s74_s27 = int_to_ptr.vmem [resolvable:$true] %s73_s27 }
  0x25   :  { %s743_s13 = scalar_lea.hbm %s1009_s8, 16 }
  0x26   :  { %p744_p2 = scmp.ne.s32.totalorder %s1009_s8, %s743_s13  ;;  %p747_p3 = scmp.lt.u32.totalorder %s743_s13, %s1009_s8 }
  0x28   :  { %p749_p4 = pnand %p747_p3, %p744_p2 }
  0x2a   :  { %752 = shalt.err (!%p749_p4)
}
  0x2b   :  { %s753_s1 = scalar_lea.vmem %s62_s25, 16  ;;  %s757_s20 = scalar_lea.vmem %s62_s25, 32 }
  0x2c   :  { %p754_p5 = scmp.ne.s32.totalorder %s62_s25, %s753_s1  ;;  %p758_p6 = scmp.lt.s32.totalorder %s62_s25, %s62_s25 }
  0x2d   :  { %p759_p7 = scmp.lt.s32.totalorder %s757_s20, %s753_s1 }
  0x2f   :  { %p760_p8 = por %p759_p7, %p758_p6 }
  0x31   :  { %p761_p9 = pnand %p760_p8, %p754_p5 }
  0x33   :  { %764 = shalt.err (!%p761_p9)
}
  0x34   :  { %64 = dma.hbm_to_vmem [thread:$0]  %s1009_s8, 16, %s62_s25, [#allocation5]  }
  0x35   :  { %s765_s22 = scalar_lea.hbm %s1011_s10, 16 }
  0x36   :  { %p766_p10 = scmp.ne.s32.totalorder %s1011_s10, %s765_s22  ;;  %p769_p11 = scmp.lt.u32.totalorder %s765_s22, %s1011_s10 }
  0x38   :  { %p771_p12 = pnand %p769_p11, %p766_p10 }
  0x3a   :  { %774 = shalt.err (!%p771_p12)
}
  0x3b   :  { %s775_s26 = scalar_lea.vmem %s74_s27, 16  ;;  %s779_s28 = scalar_lea.vmem %s74_s27, 32 }
  0x3c   :  { %p776_p13 = scmp.ne.s32.totalorder %s74_s27, %s775_s26  ;;  %p780_p0 = scmp.lt.s32.totalorder %s74_s27, %s74_s27 }
  0x3d   :  { %p781_p1 = scmp.lt.s32.totalorder %s779_s28, %s775_s26 }
  0x3f   :  { %p782_p2 = por %p781_p1, %p780_p0 }
  0x41   :  { %p783_p3 = pnand %p782_p2, %p776_p13 }
  0x43   :  { %786 = shalt.err (!%p783_p3)
}
  0x44   :  { %76 = dma.hbm_to_vmem [thread:$0]  %s1011_s10, 16, %s74_s27, [#allocation8]  }
  0x45   :  { %787 = dma.done.wait [#allocation3], 1024  }
  0x46   :  { %788 = vsyncadd [#allocation3], 4294966272 }
  0x47   :  { %789 = dma.done.wait [#allocation5], 1040  }
  0x48   :  { %790 = vsyncadd [#allocation5], 4294966256 }
  0x49   :  { %791 = dma.done.wait [#allocation8], 16  }
  0x4a   :  { %792 = vsyncadd [#allocation8], 4294967280  ;;  %v799_v0 = vmov 0.0   ;;  %vm800_vm0 = vmmov 0   ;;  %v666_v1 = vld [vmem:[#allocation2] sm:$0xff]   ;;  %v667_v2 = vld [vmem:[#allocation2 + $0x8] sm:$0xff]   ;;  %v90_v18 = vlaneseq }
  0x4b   :  { %598 = vmatprep.subr.bf16.mxu0 %v799_v0  ;;  %614 = vmatprep.mubr.msk.bf16.mxu0 %vm800_vm0, %v799_v0  ;;  %v668_v3 = vld [vmem:[#allocation2 + $0x10] sm:$0xff]   ;;  %v669_v4 = vld [vmem:[#allocation2 + $0x18] sm:$0xff]   ;;  %v670_v5 = vld [vmem:[#allocation2 + $0x20] sm:$0xff]  }
  0x4c   :  { %618 = vmatprep.subr.bf16.mxu1 %v799_v0  ;;  %634 = vmatprep.mubr.msk.bf16.mxu1 %vm800_vm0, %v799_v0  ;;  %v671_v6 = vld [vmem:[#allocation2 + $0x28] sm:$0xff]   ;;  %v672_v7 = vld [vmem:[#allocation2 + $0x30] sm:$0xff]   ;;  %v673_v8 = vld [vmem:[#allocation2 + $0x38] sm:$0xff]   ;;  %v91_v19 = vand.u32 127, %v90_v18 }
  0x4d   :  { %599 = vmatpush3.bf16.msra.mxu0 %v666_v1  ;;  %v674_v9 = vld [vmem:[%s1001_s0] sm:$0xff]   ;;  %v676_v31 = vld [vmem:[#allocation4 + $0x8] sm:$0xff]   ;;  %v677_v32 = vld [vmem:[#allocation4 + $0x10] sm:$0xff]  }
  0x4e   :  { %600 = vmatprep.subr.bf16.mxu0 %v799_v0  ;;  %v539_v10 = vld [vmem:[%s1003_s2] ss:$0 sm:$0xff]  ;;  %vm92_vm1 = vcmp.lt.s32.totalorder %v91_v19, 32  ;;  %v678_v33 = vld [vmem:[#allocation4 + $0x18] sm:$0xff]   ;;  %v680_v35 = vld [vmem:[#allocation4 + $0x28] sm:$0xff]  }
  0x4f   :  { %v675_v17 = vld [vmem:[#allocation4] sm:$0xff]   ;;  %v940_v22 = vsel %vm92_vm1, 1.0, %v799_v0  ;;  %v681_v36 = vld [vmem:[#allocation4 + $0x30] sm:$0xff]   ;;  %v682_v37 = vld [vmem:[#allocation4 + $0x38] sm:$0xff]  }
  0x50   :  { %619 = vmatpush3.bf16.msra.mxu1 %v675_v17  ;;  %v679_v34 = vld [vmem:[#allocation4 + $0x20] sm:$0xff]   ;;  %v689_v17 = vld [vmem:[%s1010_s9 + $0x30] sm:$0xff]   ;;  %v690_v18 = vld [vmem:[%s1010_s9 + $0x38] sm:$0xff]  }
  0x51   :  { %601 = vmatpush3.bf16.msra.mxu0 %v667_v2  ;;  %620 = vmatprep.subr.bf16.mxu1 %v799_v0  ;;  %v549_v45 = vld [vmem:[%s1004_s3] ss:$0 sm:$0xff] }
  0x52   :  { %602 = vmatprep.subr.bf16.mxu0 %v799_v0  ;;  %v550_v49 = vld [vmem:[%s1005_s4] ss:$0 sm:$0xff] }
  0x53   :  { %v551_v57 = vld [vmem:[%s1007_s6] ss:$0 sm:$0xff] }
  0x54   :  { %621 = vmatpush3.bf16.msra.mxu1 %v676_v31  ;;  %v683_v1 = vld [vmem:[%s1010_s9] sm:$0xff]  }
  0x55   :  { %603 = vmatpush3.bf16.msra.mxu0 %v668_v3  ;;  %622 = vmatprep.subr.bf16.mxu1 %v799_v0 }
  0x56   :  { %604 = vmatprep.subr.bf16.mxu0 %v799_v0 }
  0x58   :  { %623 = vmatpush3.bf16.msra.mxu1 %v677_v32 }
  0x59   :  { %605 = vmatpush3.bf16.msra.mxu0 %v669_v4  ;;  %624 = vmatprep.subr.bf16.mxu1 %v799_v0 }
  0x5a   :  { %606 = vmatprep.subr.bf16.mxu0 %v799_v0 }
  0x5c   :  { %625 = vmatpush3.bf16.msra.mxu1 %v678_v33 }
  0x5d   :  { %607 = vmatpush3.bf16.msra.mxu0 %v670_v5  ;;  %626 = vmatprep.subr.bf16.mxu1 %v799_v0 }
  0x5e   :  { %608 = vmatprep.subr.bf16.mxu0 %v799_v0 }
  0x60   :  { %627 = vmatpush3.bf16.msra.mxu1 %v679_v34 }
  0x61   :  { %609 = vmatpush3.bf16.msra.mxu0 %v671_v6  ;;  %628 = vmatprep.subr.bf16.mxu1 %v799_v0 }
  0x62   :  { %610 = vmatprep.subr.bf16.mxu0 %v799_v0 }
  0x64   :  { %629 = vmatpush3.bf16.msra.mxu1 %v680_v35 }
  0x65   :  { %611 = vmatpush3.bf16.msra.mxu0 %v672_v7  ;;  %630 = vmatprep.subr.bf16.mxu1 %v799_v0 }
  0x66   :  { %612 = vmatprep.subr.bf16.mxu0 %v799_v0 }
  0x68   :  { %631 = vmatpush3.bf16.msra.mxu1 %v681_v36 }
  0x69   :  { %613 = vmatpush3.bf16.msra.mxu0 %v673_v8  ;;  %632 = vmatprep.subr.bf16.mxu1 %v799_v0 }
  0x6a   :  { %638 = vmatprep.subr.bf16.mxu0 %v799_v0 }
  0x6c   :  { %615 = vmatmul.mubr.bf16.vlgmr.msra.gmra.mrb[0].mxu0 %v674_v9  ;;  %633 = vmatpush3.bf16.msra.mxu1 %v682_v37  ;;  %v562_v37 = vld [vmem:[#allocation7] ss:$0 sm:$0xff] }
  0x6d   :  { %654 = vmatprep.mubr.msk.bf16.mxu0 %vm800_vm0, %v799_v0  ;;  %639 = vmatpush3.bf16.msra.mxu0 %v683_v1 }
  0x6e   :  { %640 = vmatprep.subr.bf16.mxu0 %v799_v0 }
 0x13f   :  { %v208_v11 = vpop.f32.mrb[0].mxu0 }
 0x140   :  { %v209_v12 = vadd.f32 %v539_v10, %v208_v11  ;;  %v616_v13 = vpop.f32.mrb[1].mxu0 }
 0x141   :  { %v211_v14 = vpop.f32.mrb[2].mxu0  ;;  %v685_v13 = vld [vmem:[%s1010_s9 + $0x10] sm:$0xff]  }
 0x142   :  { %215 = vadd.xlane.f32.xlu0 %v209_v12  ;;  %v617_v15 = vpop.f32.mrb[3].mxu0  ;;  %v212_v16 = vadd.f32 %v539_v10, %v211_v14  ;;  %v686_v14 = vld [vmem:[%s1010_s9 + $0x18] sm:$0xff]  }
 0x143   :  { %v687_v15 = vld [vmem:[%s1010_s9 + $0x20] sm:$0xff]  }
 0x146   :  { %217 = vadd.xlane.f32.xlu0 %v212_v16 }
 0x1cf   :  { %v216_v20 = vpop.xlane.xlu0 %215 }
 0x1d0   :  { %v219_v21 = vmul.f32 0.03125, %v216_v20 }
 0x1d2   :  { %v221_v23 = vsub.f32 %v209_v12, %v219_v21  ;;  %v684_v12 = vld [vmem:[%s1010_s9 + $0x8] sm:$0xff]  }
 0x1d3   :  { %v218_v24 = vpop.xlane.xlu0 %217  ;;  %641 = vmatpush3.bf16.msra.mxu0 %v684_v12 }
 0x1d4   :  { %v220_v25 = vmul.f32 0.03125, %v218_v24  ;;  %v223_v26 = vmul.f32 %v940_v22, %v221_v23  ;;  %642 = vmatprep.subr.bf16.mxu0 %v799_v0 }
 0x1d6   :  { %v222_v27 = vsub.f32 %v212_v16, %v220_v25  ;;  %v225_v28 = vmul.f32 %v223_v26, %v223_v26  ;;  %v688_v16 = vld [vmem:[%s1010_s9 + $0x28] sm:$0xff]   ;;  %v560_v26 = vld [vmem:[%s1008_s7] ss:$0 sm:$0xff] }
 0x1d7   :  { %643 = vmatpush3.bf16.msra.mxu0 %v685_v13 }
 0x1d8   :  { %227 = vadd.xlane.f32.xlu1 %v225_v28  ;;  %v224_v29 = vmul.f32 %v940_v22, %v222_v27  ;;  %644 = vmatprep.subr.bf16.mxu0 %v799_v0 }
 0x1da   :  { %v226_v30 = vmul.f32 %v224_v29, %v224_v29  ;;  %v561_v29 = vld [vmem:[#allocation6] ss:$0 sm:$0xff] }
 0x1db   :  { %645 = vmatpush3.bf16.msra.mxu0 %v686_v14 }
 0x1dc   :  { %229 = vadd.xlane.f32.xlu1 %v226_v30  ;;  %646 = vmatprep.subr.bf16.mxu0 %v799_v0 }
 0x1df   :  { %647 = vmatpush3.bf16.msra.mxu0 %v687_v15 }
 0x1e0   :  { %648 = vmatprep.subr.bf16.mxu0 %v799_v0 }
 0x1e3   :  { %649 = vmatpush3.bf16.msra.mxu0 %v688_v16 }
 0x1e4   :  { %650 = vmatprep.subr.bf16.mxu0 %v799_v0 }
 0x1e7   :  { %651 = vmatpush3.bf16.msra.mxu0 %v689_v17 }
 0x1e8   :  { %652 = vmatprep.subr.bf16.mxu0 %v799_v0 }
 0x1eb   :  { %653 = vmatpush3.bf16.msra.mxu0 %v690_v18 }
 0x265   :  { %v228_v38 = vpop.xlane.xlu1 %227 }
 0x266   :  { %v231_v39 = vmul.f32 0.03125, %v228_v38 }
 0x268   :  { %v233_v40 = vadd.f32 1e-05, %v231_v39 }
 0x269   :  { %v230_v41 = vpop.xlane.xlu1 %229 }
 0x26a   :  { %691 = vrsqrt.f32 %v233_v40  ;;  %v232_v42 = vmul.f32 0.03125, %v230_v41 }
 0x26c   :  { %v234_v43 = vadd.f32 1e-05, %v232_v42 }
 0x26e   :  { %693 = vrsqrt.f32 %v234_v43 }
 0x274   :  { %v692_v44 = vpop.eup %691 }
 0x275   :  { %v237_v46 = vmul.f32 %v692_v44, %v221_v23 }
 0x277   :  { %v246_v47 = vmul.f32 %v549_v45, %v237_v46 }
 0x278   :  { %v694_v48 = vpop.eup %693 }
 0x279   :  { %v238_v50 = vmul.f32 %v694_v48, %v222_v27  ;;  %v255_v52 = vadd.f32 %v550_v49, %v246_v47 }
 0x27b   :  { %v247_v51 = vmul.f32 %v549_v45, %v238_v50  ;;  %v257_v54 = vmax.f32 %v255_v52, 0.0 }
 0x27d   :  { %v256_v53 = vadd.f32 %v550_v49, %v247_v51 }
 0x27f   :  { %v258_v55 = vmax.f32 %v256_v53, 0.0 }
 0x281   :  { %v259_v56 = vpack.c.bf16 %v258_v55, %v257_v54 }
 0x283   :  { %635 = vmatmul.mubr.bf16.vlgmr.msra.gmra.mrb[0].mxu1 %v259_v56 }
 0x356   :  { %v365_v58 = vpop.f32.mrb[0].mxu1 }
 0x357   :  { %v366_v59 = vadd.f32 %v551_v57, %v365_v58  ;;  %v636_v60 = vpop.f32.mrb[1].mxu1 }
 0x358   :  { %v368_v61 = vpop.f32.mrb[2].mxu1 }
 0x359   :  { %v369_v62 = vadd.f32 %v551_v57, %v368_v61  ;;  %372 = vadd.xlane.f32.xlu0 %v366_v59  ;;  %v637_v63 = vpop.f32.mrb[3].mxu1 }
 0x35b   :  { %374 = vadd.xlane.f32.xlu1 %v369_v62 }
 0x3e6   :  { %v373_v2 = vpop.xlane.xlu0 %372 }
 0x3e7   :  { %v376_v3 = vmul.f32 0.03125, %v373_v2 }
 0x3e8   :  { %v375_v4 = vpop.xlane.xlu1 %374 }
 0x3e9   :  { %v378_v5 = vsub.f32 %v366_v59, %v376_v3  ;;  %v377_v6 = vmul.f32 0.03125, %v375_v4 }
 0x3eb   :  { %v379_v7 = vsub.f32 %v369_v62, %v377_v6  ;;  %v380_v8 = vmul.f32 %v940_v22, %v378_v5 }
 0x3ed   :  { %v382_v9 = vmul.f32 %v380_v8, %v380_v8  ;;  %v381_v10 = vmul.f32 %v940_v22, %v379_v7 }
 0x3ef   :  { %384 = vadd.xlane.f32.xlu0 %v382_v9  ;;  %v383_v11 = vmul.f32 %v381_v10, %v381_v10 }
 0x3f1   :  { %386 = vadd.xlane.f32.xlu1 %v383_v11 }
 0x47c   :  { %v385_v19 = vpop.xlane.xlu0 %384 }
 0x47d   :  { %v388_v20 = vmul.f32 0.03125, %v385_v19 }
 0x47e   :  { %v387_v21 = vpop.xlane.xlu1 %386 }
 0x47f   :  { %v390_v22 = vadd.f32 1e-05, %v388_v20  ;;  %v389_v23 = vmul.f32 0.03125, %v387_v21 }
 0x481   :  { %695 = vrsqrt.f32 %v390_v22  ;;  %v391_v24 = vadd.f32 1e-05, %v389_v23 }
 0x483   :  { %697 = vrsqrt.f32 %v391_v24 }
 0x48b   :  { %v696_v25 = vpop.eup %695 }
 0x48c   :  { %v394_v27 = vmul.f32 %v696_v25, %v378_v5 }
 0x48d   :  { %v698_v28 = vpop.eup %697 }
 0x48e   :  { %v395_v30 = vmul.f32 %v698_v28, %v379_v7  ;;  %v403_v31 = vmul.f32 %v560_v26, %v394_v27 }
 0x490   :  { %v404_v0 = vmul.f32 %v560_v26, %v395_v30  ;;  %v412_v32 = vadd.f32 %v561_v29, %v403_v31 }
 0x492   :  { %v413_v33 = vadd.f32 %v561_v29, %v404_v0  ;;  %v414_v34 = vmax.f32 %v412_v32, 0.0 }
 0x494   :  { %v415_v35 = vmax.f32 %v413_v33, 0.0 }
 0x496   :  { %v416_v36 = vpack.c.bf16 %v415_v35, %v414_v34 }
 0x498   :  { %655 = vmatmul.mubr.bf16.vlgmr.msra.gmra.mrb[4].mxu0 %v416_v36 }
 0x56b   :  { %v522_v38 = vpop.f32.mrb[4].mxu0 }
 0x56c   :  { %v523_v39 = vadd.f32 %v562_v37, %v522_v38  ;;  %v656_v40 = vpop.f32.mrb[5].mxu0 }
 0x56d   :  { %v525_v41 = vpop.f32.mrb[6].mxu0 }
 0x56e   :  { %529 = vst [vmem:[%s1012_s11] sm:$0xff] %v523_v39  ;;  %v526_v42 = vadd.f32 %v562_v37, %v525_v41  ;;  %v657_v43 = vpop.f32.mrb[7].mxu0 }
 0x570   :  { %530 = vst [vmem:[%s1012_s11 + $0x8] sm:$0xff] %v526_v42 }
 0x571   :  { %535 = vsyncpa [#allocation3], 1 }
 0x572   :  { %536 = vsyncpa [#allocation5], 1 }
 0x573   :  { %537 = vsyncpa [#allocation8], 1 }

</bundles_post_ra>
